<compile_context>
chip_gen: v7x
topology: tpu7x:2x2x1
jax: 0.10.0
libtpu: 0.0.40
codegen_flags: <defaults>
</compile_context>

<pallas_src>
import functools
import math

import jax
import jax.numpy as jnp
from jax import lax
from jax.experimental import pallas as pl
from jax.experimental.pallas import tpu as pltpu

_LOG2 = math.log(2.0)


def _logsigmoid(x):
    # Numerically stable log(sigmoid(x)) = min(x, 0) - log1p(exp(-|x|))
    return jnp.minimum(x, 0.0) - jnp.log1p(jnp.exp(-jnp.abs(x)))


def _nce_kernel(ref_ref, pos_ref, negT_ref, align_ref, unif_ref,
                rs_ref, acc_ref, *, inv_temperature, reduce, m_total, m_padded):
    mt = pl.program_id(1)
    last_mt = pl.num_programs(1) - 1

    @pl.when(mt == 0)
    def _():
        # Scale the resident reference tile by 1/T once per n tile (not once
        # per m step) and zero the uniform accumulator.
        rs_ref[...] = (ref_ref[...] * inv_temperature).astype(rs_ref.dtype)
        acc_ref[...] = jnp.zeros_like(acc_ref)

    # Negative logits for this m tile: clean MXU push, f32 accumulation.
    neg_dist = lax.dot_general(
        rs_ref[...], negT_ref[...],
        dimension_numbers=(((1,), (0,)), ((), ())),
        preferred_element_type=jnp.float32)                          # (TN, TM)

    # No per-step masking: padded columns are handled analytically at finalize.
    # TODO(synk): optional bf16 logsigmoid on v6e/v7x (EUP-bound small-d case).
    acc_ref[...] += jnp.sum(_logsigmoid(-neg_dist), axis=1, keepdims=True)

    @pl.when(mt == last_mt)
    def _():
        # Positive-pair logits: f32 elementwise mul + lane reduce, then scale
        # (matches the reference's sum-then-divide ordering).
        pos_dist = jnp.sum(
            ref_ref[...].astype(jnp.float32) * pos_ref[...].astype(jnp.float32),
            axis=1, keepdims=True) * inv_temperature                 # (TN, 1)
        align = _logsigmoid(pos_dist)

        uniform = acc_ref[...]
        # Zero-padded negative columns each contributed logsigmoid(0) = -log 2
        # to the running sum; cancel them here instead of masking every step.
        pad_cols = m_padded - m_total
        if pad_cols > 0:
            uniform = uniform + pad_cols * _LOG2
        if reduce == 'mean':
            uniform = uniform * (1.0 / m_total)

        align_ref[...] = align
        unif_ref[...] = uniform


def _round_up(x, k):
    return (x + k - 1) // k * k


def _vmem_footprint(tile_n, tile_m, d, esize):
    """Rough VMEM footprint (bytes) of the pipeline + scratch + f32 temps."""
    ref_pos = 2 * 2 * tile_n * d * esize      # ref + pos, double-buffered
    negt = 2 * d * tile_m * esize             # neg^T, double-buffered
    rs = tile_n * d * esize                   # scaled-ref scratch
    acc = tile_n * 4                          # accumulator scratch
    outs = 2 * 2 * tile_n * 4                 # align / uniform output blocks
    temps = 3 * tile_n * tile_m * 4           # neg_dist + logsigmoid f32 temps
    return ref_pos + negt + rs + acc + outs + temps


def nce_forward(ref, pos, neg, *, temperature=1.0, negative_weight=1.0,
                reduce='mean', tile_n=None, tile_m=None, use_bf16_matmul=False):
    """Pallas TPU implementation of NCE.forward.

    Args:
      ref: (n, d) reference samples.
      pos: (n, d) positive samples.
      neg: (m, d) negative samples.
    Returns:
      (loss, align, uniform) each of shape (n,), float32.
    """
    assert reduce in ('mean', 'sum')
    n, d = ref.shape
    m, d2 = neg.shape
    assert pos.shape == (n, d) and d2 == d

    esize = jnp.dtype(ref.dtype).itemsize

    # ---- tile selection (auto unless user-specified) -----------------------
    auto_m = tile_m is None
    if auto_m:
        tile_m = 1024 if d <= 512 else 512
    tile_m = min(_round_up(tile_m, 128), _round_up(m, 128))

    auto_n = tile_n is None
    if auto_n:
        tile_n = 512
    tile_n = min(_round_up(tile_n, 8), _round_up(n, 8))

    # v7x megacore: keep >= 2 tiles along the parallel n axis when auto-tiling.
    if auto_n and n >= 16 and _round_up(n, tile_n) // tile_n < 2:
        tile_n = _round_up((n + 1) // 2, 8)

    # Shrink auto tiles until the VMEM footprint fits a conservative budget
    # (safe for v7x's 64 MiB per-TC VMEM while keeping double buffering).
    budget = 28 * 1024 * 1024
    while auto_m and tile_m > 256 and _vmem_footprint(tile_n, tile_m, d, esize) > budget:
        tile_m = _round_up(tile_m // 2, 128)
    while auto_n and tile_n > 256 and _vmem_footprint(tile_n, tile_m, d, esize) > budget:
        tile_n = _round_up(tile_n // 2, 8)

    n_pad = _round_up(n, tile_n)
    m_pad = _round_up(m, tile_m)

    # ---- operand layout / padding -----------------------------------------
    if n_pad != n:
        ref = jnp.pad(ref, ((0, n_pad - n), (0, 0)))
        pos = jnp.pad(pos, ((0, n_pad - n), (0, 0)))

    mxu_dtype = jnp.bfloat16 if use_bf16_matmul else ref.dtype

    # MXU-friendly RHS layout: contraction dim d on sublanes, m on lanes.
    neg_t = neg.T.astype(mxu_dtype)
    if m_pad != m:
        neg_t = jnp.pad(neg_t, ((0, 0), (0, m_pad - m)))  # zero pad -> -log2 fix

    grid = (n_pad // tile_n, m_pad // tile_m)

    footprint = _vmem_footprint(tile_n, tile_m, d, esize)
    try:
        phys_vmem = getattr(pltpu.get_tpu_info(), 'vmem_capacity_bytes',
                            64 * 1024 * 1024)
    except Exception:  # pragma: no cover - conservative fallback off-TPU
        phys_vmem = 64 * 1024 * 1024
    vmem_limit = int(min(max(int(footprint * 1.3) + (2 << 20), 16 << 20),
                         phys_vmem - (8 << 20)))

    kernel = functools.partial(
        _nce_kernel,
        inv_temperature=1.0 / float(temperature),
        reduce=reduce,
        m_total=m,
        m_padded=m_pad)

    out_shapes = (
        jax.ShapeDtypeStruct((n_pad, 1), jnp.float32),   # align
        jax.ShapeDtypeStruct((n_pad, 1), jnp.float32),   # uniform
    )

    align, uniform = pl.pallas_call(
        kernel,
        out_shape=out_shapes,
        grid_spec=pltpu.PrefetchScalarGridSpec(
            num_scalar_prefetch=0,
            grid=grid,
            in_specs=[
                pl.BlockSpec((tile_n, d), lambda nt, mt: (nt, 0)),   # ref (resident)
                pl.BlockSpec((tile_n, d), lambda nt, mt: (nt, 0)),   # pos (resident)
                pl.BlockSpec((d, tile_m), lambda nt, mt: (0, mt)),   # neg^T (streamed)
            ],
            out_specs=[
                pl.BlockSpec((tile_n, 1), lambda nt, mt: (nt, 0)),   # align
                pl.BlockSpec((tile_n, 1), lambda nt, mt: (nt, 0)),   # uniform
            ],
            scratch_shapes=[
                pltpu.VMEM((tile_n, d), mxu_dtype),      # scaled ref (once / n tile)
                pltpu.VMEM((tile_n, 1), jnp.float32),    # uniform accumulator
            ],
        ),
        compiler_params=pltpu.CompilerParams(
            dimension_semantics=("parallel", "arbitrary"),
            vmem_limit_bytes=vmem_limit),
    )(ref, pos, neg_t)

    align = align[:n, 0]
    uniform = uniform[:n, 0]
    loss = align + negative_weight * uniform
    return loss, align, uniform


def _nce_reference(ref, pos, neg, *, temperature=1.0, negative_weight=1.0,
                   reduce='mean'):
    """Pure-JAX reference (mirrors the PyTorch module)."""
    pos_dist = jnp.einsum('ni,ni->n', ref, pos) / temperature
    neg_dist = jnp.einsum('ni,mi->nm', ref, neg) / temperature
    align = jax.nn.log_sigmoid(pos_dist)
    red = jnp.mean if reduce == 'mean' else jnp.sum
    uniform = red(jax.nn.log_sigmoid(-neg_dist), axis=1)
    return align + negative_weight * uniform, align, uniform


if __name__ == "__main__":
    # Small shapes chosen to exercise n padding, m padding (analytic -log2
    # correction) and both the single- and multi-m-tile reduction paths.
    n, m, d = 20, 200, 32
    key = jax.random.PRNGKey(0)
    k1, k2, k3 = jax.random.split(key, 3)
    ref = jax.random.normal(k1, (n, d), dtype=jnp.float32)
    pos = jax.random.normal(k2, (n, d), dtype=jnp.float32)
    neg = jax.random.normal(k3, (m, d), dtype=jnp.float32)

    temperature = 0.5
    negative_weight = 1.0

    configs = [
        # (reduce, tile_n, tile_m)  -- None means auto tiling.
        ('mean', None, None),   # auto: tile_n=16 (2 n-tiles), tile_m=256 (1 m-tile)
        ('sum', 8, 128),        # forced small tiles: 3 n-tiles x 2 m-tiles
    ]

    ok = True
    for red, tn, tm in configs:
        loss, align, uniform = nce_forward(
            ref, pos, neg,
            temperature=temperature,
            negative_weight=negative_weight,
            reduce=red,
            tile_n=tn, tile_m=tm)
        jax.block_until_ready((loss, align, uniform))

        loss_r, align_r, unif_r = _nce_reference(
            ref, pos, neg,
            temperature=temperature,
            negative_weight=negative_weight,
            reduce=red)

        ok &= loss.shape == (n,) and align.shape == (n,) and uniform.shape == (n,)
        ok &= bool(jnp.allclose(loss, loss_r, atol=1e-4, rtol=1e-5))
        ok &= bool(jnp.allclose(align, align_r, atol=1e-5, rtol=1e-5))
        ok &= bool(jnp.allclose(uniform, unif_r, atol=1e-4, rtol=1e-5))

    assert ok
    print("KERNEL_OK")
</pallas_src>

<mosaic_0001>
module attributes {stable_mosaic.version = 11 : i64} {
  func.func @_nce_kernel(%arg0: i32, %arg1: i32, %arg2: memref<16x32xf32, #tpu.memory_space<vmem>>, %arg3: memref<16x32xf32, #tpu.memory_space<vmem>>, %arg4: memref<32x256xf32, #tpu.memory_space<vmem>>, %arg5: memref<16x1xf32, #tpu.memory_space<vmem>>, %arg6: memref<16x1xf32, #tpu.memory_space<vmem>>, %arg7: memref<16x32xf32, #tpu.memory_space<vmem>>, %arg8: memref<16x1xf32, #tpu.memory_space<vmem>>) attributes {dimension_semantics = [#tpu.dimension_semantics<parallel>, #tpu.dimension_semantics<arbitrary>], iteration_bounds = array<i64: 2, 1>, scalar_prefetch = 0 : i64, scratch_operands = 2 : i64, tpu.core_type = #tpu.core_type<tc>, window_params = [{transform_indices = @transform_0, window_bounds = array<i64: 16, 32>}, {transform_indices = @transform_1, window_bounds = array<i64: 16, 32>}, {transform_indices = @transform_2, window_bounds = array<i64: 32, 256>}, {transform_indices = @transform_3, window_bounds = array<i64: 16, 1>}, {transform_indices = @transform_4, window_bounds = array<i64: 16, 1>}]} {
    %c0_i32 = arith.constant 0 : i32
    %0 = arith.cmpi eq, %arg1, %c0_i32 : i32
    %1 = arith.extui %0 : i1 to i32
    %c0_i32_0 = arith.constant 0 : i32
    %2 = arith.cmpi ne, %1, %c0_i32_0 : i32
    scf.if %2 {
      %c0_14 = arith.constant 0 : index
      %c0_15 = arith.constant 0 : index
      %24 = vector.load %arg2[%c0_14, %c0_15] : memref<16x32xf32, #tpu.memory_space<vmem>>, vector<16x32xf32>
      %cst_16 = arith.constant 2.000000e+00 : f32
      %25 = vector.broadcast %cst_16 : f32 to vector<16x32xf32>
      %26 = arith.mulf %24, %25 : vector<16x32xf32>
      %c0_17 = arith.constant 0 : index
      %c0_18 = arith.constant 0 : index
      %27 = vector.load %arg7[%c0_17, %c0_18] : memref<16x32xf32, #tpu.memory_space<vmem>>, vector<16x32xf32>
      tpu.vector_store %arg7[%c0_17, %c0_18], %26 {strides = array<i32>} : memref<16x32xf32, #tpu.memory_space<vmem>>, vector<16x32xf32>,
      %cst_19 = arith.constant 0.000000e+00 : f32
      %28 = vector.broadcast %cst_19 : f32 to vector<16x1xf32>
      %c0_20 = arith.constant 0 : index
      %c0_21 = arith.constant 0 : index
      %29 = vector.load %arg8[%c0_20, %c0_21] : memref<16x1xf32, #tpu.memory_space<vmem>>, vector<16x1xf32>
      tpu.vector_store %arg8[%c0_20, %c0_21], %28 {strides = array<i32>} : memref<16x1xf32, #tpu.memory_space<vmem>>, vector<16x1xf32>,
    } else {
    }
    %c0 = arith.constant 0 : index
    %c0_1 = arith.constant 0 : index
    %3 = vector.load %arg7[%c0, %c0_1] : memref<16x32xf32, #tpu.memory_space<vmem>>, vector<16x32xf32>
    %c0_2 = arith.constant 0 : index
    %c0_3 = arith.constant 0 : index
    %4 = vector.load %arg4[%c0_2, %c0_3] : memref<32x256xf32, #tpu.memory_space<vmem>>, vector<32x256xf32>
    %cst = arith.constant dense<0.000000e+00> : vector<16x256xf32>
    %5 = tpu.matmul %3, %4, %cst {dimension_numbers = #tpu.dot_dimension_numbers<[1], [0], [0], [1], [0, 0, 1, 1], [], []>} : vector<16x32xf32>, vector<32x256xf32>, vector<16x256xf32> -> vector<16x256xf32>
    %c0_4 = arith.constant 0 : index
    %c0_5 = arith.constant 0 : index
    %6 = vector.load %arg8[%c0_4, %c0_5] : memref<16x1xf32, #tpu.memory_space<vmem>>, vector<16x1xf32>
    %cst_6 = arith.constant 0.000000e+00 : f32
    %7 = vector.broadcast %cst_6 : f32 to vector<16x256xf32>
    %8 = arith.subf %7, %5 : vector<16x256xf32>
    %cst_7 = arith.constant 0.000000e+00 : f32
    %9 = vector.broadcast %cst_7 : f32 to vector<16x256xf32>
    %10 = arith.minimumf %8, %9 : vector<16x256xf32>
    %11 = math.absf %8 : vector<16x256xf32>
    %cst_8 = arith.constant 0.000000e+00 : f32
    %12 = vector.broadcast %cst_8 : f32 to vector<16x256xf32>
    %13 = arith.subf %12, %11 : vector<16x256xf32>
    %14 = math.exp %13 : vector<16x256xf32>
    %15 = math.log1p %14 : vector<16x256xf32>
    %16 = arith.subf %10, %15 : vector<16x256xf32>
    %cst_9 = arith.constant dense<0.000000e+00> : vector<16xf32>
    %17 = vector.multi_reduction <add>, %16, %cst_9 [1] : vector<16x256xf32> to vector<16xf32>
    %18 = vector.shape_cast %17 : vector<16xf32> to vector<16x1xf32>
    %19 = arith.addf %6, %18 : vector<16x1xf32>
    %c0_10 = arith.constant 0 : index
    %c0_11 = arith.constant 0 : index
    %20 = vector.load %arg8[%c0_10, %c0_11] : memref<16x1xf32, #tpu.memory_space<vmem>>, vector<16x1xf32>
    tpu.vector_store %arg8[%c0_10, %c0_11], %19 {strides = array<i32>} : memref<16x1xf32, #tpu.memory_space<vmem>>, vector<16x1xf32>,
    %c0_i32_12 = arith.constant 0 : i32
    %21 = arith.cmpi eq, %arg1, %c0_i32_12 : i32
    %22 = arith.extui %21 : i1 to i32
    %c0_i32_13 = arith.constant 0 : i32
    %23 = arith.cmpi ne, %22, %c0_i32_13 : i32
    scf.if %23 {
      %c0_14 = arith.constant 0 : index
      %c0_15 = arith.constant 0 : index
      %24 = vector.load %arg2[%c0_14, %c0_15] : memref<16x32xf32, #tpu.memory_space<vmem>>, vector<16x32xf32>
      %c0_16 = arith.constant 0 : index
      %c0_17 = arith.constant 0 : index
      %25 = vector.load %arg3[%c0_16, %c0_17] : memref<16x32xf32, #tpu.memory_space<vmem>>, vector<16x32xf32>
      %26 = arith.mulf %24, %25 : vector<16x32xf32>
      %cst_18 = arith.constant dense<0.000000e+00> : vector<16xf32>
      %27 = vector.multi_reduction <add>, %26, %cst_18 [1] : vector<16x32xf32> to vector<16xf32>
      %28 = vector.shape_cast %27 : vector<16xf32> to vector<16x1xf32>
      %cst_19 = arith.constant 2.000000e+00 : f32
      %29 = vector.broadcast %cst_19 : f32 to vector<16x1xf32>
      %30 = arith.mulf %28, %29 : vector<16x1xf32>
      %cst_20 = arith.constant 0.000000e+00 : f32
      %31 = vector.broadcast %cst_20 : f32 to vector<16x1xf32>
      %32 = arith.minimumf %30, %31 : vector<16x1xf32>
      %33 = math.absf %30 : vector<16x1xf32>
      %cst_21 = arith.constant 0.000000e+00 : f32
      %34 = vector.broadcast %cst_21 : f32 to vector<16x1xf32>
      %35 = arith.subf %34, %33 : vector<16x1xf32>
      %36 = math.exp %35 : vector<16x1xf32>
      %37 = math.log1p %36 : vector<16x1xf32>
      %38 = arith.subf %32, %37 : vector<16x1xf32>
      %c0_22 = arith.constant 0 : index
      %c0_23 = arith.constant 0 : index
      %39 = vector.load %arg8[%c0_22, %c0_23] : memref<16x1xf32, #tpu.memory_space<vmem>>, vector<16x1xf32>
      %cst_24 = arith.constant 38.8162422 : f32
      %40 = vector.broadcast %cst_24 : f32 to vector<16x1xf32>
      %41 = arith.addf %39, %40 : vector<16x1xf32>
      %cst_25 = arith.constant 5.000000e-03 : f32
      %42 = vector.broadcast %cst_25 : f32 to vector<16x1xf32>
      %43 = arith.mulf %41, %42 : vector<16x1xf32>
      %c0_26 = arith.constant 0 : index
      %c0_27 = arith.constant 0 : index
      %44 = vector.load %arg5[%c0_26, %c0_27] : memref<16x1xf32, #tpu.memory_space<vmem>>, vector<16x1xf32>
      tpu.vector_store %arg5[%c0_26, %c0_27], %38 {strides = array<i32>} : memref<16x1xf32, #tpu.memory_space<vmem>>, vector<16x1xf32>,
      %c0_28 = arith.constant 0 : index
      %c0_29 = arith.constant 0 : index
      %45 = vector.load %arg6[%c0_28, %c0_29] : memref<16x1xf32, #tpu.memory_space<vmem>>, vector<16x1xf32>
      tpu.vector_store %arg6[%c0_28, %c0_29], %43 {strides = array<i32>} : memref<16x1xf32, #tpu.memory_space<vmem>>, vector<16x1xf32>,
    } else {
    }
    return
  }
  func.func @transform_0(%arg0: i32, %arg1: i32) -> (i32, i32) {
    %c0_i32 = arith.constant 0 : i32
    %c0_i32_0 = arith.constant 0 : i32
    return %arg0, %c0_i32 : i32, i32
  }
  func.func @transform_1(%arg0: i32, %arg1: i32) -> (i32, i32) {
    %c0_i32 = arith.constant 0 : i32
    %c0_i32_0 = arith.constant 0 : i32
    return %arg0, %c0_i32 : i32, i32
  }
  func.func @transform_2(%arg0: i32, %arg1: i32) -> (i32, i32) {
    %c0_i32 = arith.constant 0 : i32
    %c0_i32_0 = arith.constant 0 : i32
    return %c0_i32, %arg1 : i32, i32
  }
  func.func @transform_3(%arg0: i32, %arg1: i32) -> (i32, i32) {
    %c0_i32 = arith.constant 0 : i32
    %c0_i32_0 = arith.constant 0 : i32
    return %arg0, %c0_i32 : i32, i32
  }
  func.func @transform_4(%arg0: i32, %arg1: i32) -> (i32, i32) {
    %c0_i32 = arith.constant 0 : i32
    %c0_i32_0 = arith.constant 0 : i32
    return %arg0, %c0_i32 : i32, i32
  }
}

</mosaic_0001>

<bundles_post_ra>
// kernel: tpu_custom_call.1
= control target key start
LH: loop header
LB: loop body
LE: loop exit
PB: predicated region body
PF: predicated region fallthrough
CT: control target
= control target key end

     0   :  { %10 = vsyncpa [#allocation5], 0  ;;  %s1262_s0 = inlined_call_operand.hbm [shape: f32[32,32], index: 0, kind: input, shape index: {}]   ;;  %s1263_s1 = inlined_call_operand.hbm [shape: f32[32,32], index: 1, kind: input, shape index: {}]   ;;  %s1264_s2 = inlined_call_operand.hbm [shape: f32[32,256], index: 2, kind: input, shape index: {}]   ;;  %s1265_s3 = inlined_call_operand.vmem [shape: f32[32,1], index: 3, kind: output, shape index: {0}]   ;;  %s1266_s4 = inlined_call_operand.vmem [shape: f32[32,1], index: 4, kind: output, shape index: {1}]  }
   0x1   :  { %12 = vsyncpa [#allocation5 + $0x1], 0 }
   0x2   :  { %13 = vsyncpa [#allocation7], 0 }
   0x3   :  { %15 = vsyncpa [#allocation7 + $0x1], 0  ;;  %s1014_s15 = smov 0   ;;  %s1016_s16 = smov 0  }
   0x4   :  { %s1018_s17 = smov 0   ;;  %s1020_s18 = smov 0  }
   0x5   :  { %s1022_s19 = smov 0   ;;  %s1024_s20 = smov 0  }
   0x6 LB: > { %s1271_s21 = sadd.s32 4294967295, %s979_s20   ;;  %p53_p0 = scmp.ne.s32.totalorder %s963_s16, %s959_s15  ;;  %s979_s20 = sphi %s1024_s20, %s21_s20   ;;  %s975_s19 = sphi %s1022_s19, %s1285_s19   ;;  %s971_s18 = sphi %s1020_s18, %s1284_s18   ;;  %s967_s17 = sphi %s1018_s17, %s1283_s17   ;;  %s963_s16 = sphi %s1016_s16, %s1282_s16   ;;  %s959_s15 = sphi %s1014_s15, %s1281_s15  }
   0x7   : > { %p1046_p1 = scmp.eq.s32.totalorder %s1271_s21, 0  ;;  %p698_p2 = scmp.ge.s32.totalorder %s979_s20, 1 }
   0x8   : > { %p168_p3 = scmp.lt.s32.totalorder %s979_s20, 3  ;;  %s981_s25 = smov [#allocation8]  }
   0x9   : > { %s1272_s22 = scalar_select %p1046_p1, 1, 0 }
   0xa   : > { %p1054_p4 = por %p1046_p1, %p53_p0  ;;  %p1058_p5 = pnand %p698_p2, %p168_p3 }
   0xb   : > { %s183_s26 = sshll.u32 %s981_s25, 4  ;;  %s33_s28 = sadd.s32 1, %s975_s19  ;;  %s184_s26 = int_to_ptr.vmem [resolvable:$true] %s183_s26 }
   0xc   : > { %s1273_s23 = scalar_select %p1054_p4, 1, 0 }
   0xd   : > { %s1274_s24 = scalar_select %p1058_p5, 1, 0 }
   0xe   : > { %p741_p6 = pneg %p1058_p5  ;;  %s833_s5 = scalar_lea.hbm %s1264_s2, 1024 }
   0xf   : > { %p834_p8 = scmp.ne.s32.totalorder %s1264_s2, %s833_s5  ;;  %p840_p12 = scmp.lt.u32.totalorder %s833_s5, %s1264_s2 }
  0x10   : > { %p1066_p7 = pnand %p741_p6, %p1046_p1 }
  0x12   : > { %p835_p9 = pneg %p1066_p7 }
  0x14   : > { %p836_p10 = pnand %p835_p9, %p834_p8 }
  0x16   : > { %p837_p11 = pneg %p836_p10 }
  0x18   : > { %p842_p13 = pnand %p840_p12, %p837_p11 }
  0x1a   : > { %845 = shalt.err (!%p842_p13)
}
  0x1b   : > { %s846_s10 = scalar_lea.vmem %s184_s26, 1024  ;;  %p854_p6 = scmp.lt.s32.totalorder %s184_s26, %s184_s26 }
  0x1c   : > { %p847_p0 = scmp.ne.s32.totalorder %s184_s26, %s846_s10  ;;  %p855_p1 = scmp.lt.s32.totalorder %s846_s10, %s846_s10 }
  0x1e   : > { %p849_p2 = pnand %p847_p0, %p835_p9  ;;  %p856_p4 = por %p855_p1, %p854_p6 }
  0x20   : > { %p850_p3 = pneg %p849_p2 }
  0x22   : > { %p857_p5 = pnand %p856_p4, %p850_p3 }
  0x24   : > { %860 = shalt.err (!%p857_p5)
}
  0x25   : > { %s982_s11 = smov 256   ;;  %s983_s12 = smov 16  }
  0x26   : > { %744 = dma.hbm_to_vmem [thread:$0]  (!%p1066_p7), %s1264_s2, 1024, %s184_s26, [#allocation7], %s982_s11, %s982_s11, %s983_s12  }
  0x27   : > { %p35_p1 = scmp.ge.s32.totalorder %s33_s28, 2  ;;  %s40_s15 = sadd.s32 1, %s967_s17 }
  0x28   : > { %p47_p4 = scmp.ne.s32.totalorder %s967_s17, %s963_s16  ;;  %p48_p5 = scmp.eq.s32.totalorder %s979_s20, 0 }
  0x29   : > { %s1287_s28 = smov (%p35_p1, %s33_s28), 0  ;;  %p753_p9 = scmp.lt.s32.totalorder %s979_s20, 2 }
  0x2a   : > { %p49_p8 = por %p48_p5, %p47_p4  ;;  %s37_s25 = ssub.s32 %s975_s19, %s1287_s28 }
  0x2b   : > { %s197_s29 = sand.u32 1, %s967_s17   ;;  %p38_p10 = scmp.eq.s32.totalorder %s37_s25, 0 }
  0x2c   : > { %s1097_s30 = sshll.u32 %s197_s29, 4  ;;  %s719_s27 = sshll.u32 %s975_s19, 8 }
  0x2d   : > { %s1101_s5 = scalar_select %p38_p10, %s967_s17, %s40_s15  }
  0x2e   : > { %s1108_s7 = scalar_lea.hbm %s1262_s0, %s719_s27  ;;  %s201_s8 = scalar_lea.vmem [#allocation4], %s1097_s30 }
  0x2f   : > { %s208_s9 = sshll.u32 %s201_s8, 4  ;;  %p1111_p7 = pnand %p753_p9, %p49_p8  ;;  %s1115_s9 = int_to_ptr.vmem [resolvable:$true] %s208_s9 }
  0x30   : > { %s1117_s11 = scalar_lea.sflag [#allocation5], %s197_s29  ;;  %s861_s12 = scalar_lea.hbm %s1108_s7, 256 }
  0x31   : > { %p862_p11 = scmp.ne.s32.totalorder %s1108_s7, %s861_s12  ;;  %p863_p12 = pneg %p1111_p7 }
  0x32   : > { %s866_s15 = scalar_lea.hbm %s1262_s0, 512  ;;  %p867_p2 = scmp.lt.u32.totalorder %s1108_s7, %s1262_s0 }
  0x33   : > { %p864_p13 = pnand %p863_p12, %p862_p11  ;;  %p868_p3 = scmp.lt.u32.totalorder %s866_s15, %s861_s12 }
  0x34   : > { %p870_p1 = scmp.lt.u32.totalorder %s861_s12, %s1108_s7 }
  0x35   : > { %p865_p0 = pneg %p864_p13  ;;  %p869_p6 = por %p868_p3, %p867_p2 }
  0x37   : > { %p871_p4 = por %p870_p1, %p869_p6 }
  0x39   : > { %p872_p5 = pnand %p871_p4, %p865_p0 }
  0x3b   : > { %875 = shalt.err (!%p872_p5)
}
  0x3c   : > { %s876_s29 = scalar_lea.vmem %s1115_s9, 256  ;;  %s984_s6 = smov [#allocation4]  }
  0x3d   : > { %p877_p8 = scmp.ne.s32.totalorder %s1115_s9, %s876_s29  ;;  %s881_s8 = sshll.u32 %s984_s6, 4  ;;  %s882_s8 = int_to_ptr.vmem [resolvable:$false] %s881_s8 }
  0x3e   : > { %s883_s13 = scalar_lea.vmem %s882_s8, 512  ;;  %p884_p11 = scmp.lt.s32.totalorder %s1115_s9, %s882_s8 }
  0x3f   : > { %p879_p9 = pnand %p877_p8, %p863_p12  ;;  %p885_p13 = scmp.lt.s32.totalorder %s883_s13, %s876_s29 }
  0x41   : > { %p880_p10 = pneg %p879_p9  ;;  %p886_p2 = por %p885_p13, %p884_p11 }
  0x43   : > { %p887_p3 = pnand %p886_p2, %p880_p10 }
  0x45   : > { %890 = shalt.err (!%p887_p3)
}
  0x46   : > { %s985_s12 = smov 128   ;;  %s986_s14 = smov 8  }
  0x47   : > { %748 = dma.hbm_to_vmem [thread:$0]  (!%p1111_p7), %s1108_s7, 256, %s1115_s9, %s1117_s11, %s985_s12, %s985_s12, %s986_s14  }
  0x48   : > { %s1153_s26 = scalar_lea.hbm %s1263_s1, %s719_s27  ;;  %s222_s29 = scalar_lea.vmem [#allocation6], %s1097_s30 }
  0x49   : > { %s229_s6 = sshll.u32 %s222_s29, 4  ;;  %s218_s8 = sand.u32 1, %s979_s20   ;;  %s1157_s6 = int_to_ptr.vmem [resolvable:$true] %s229_s6 }
  0x4a   : > { %s1159_s13 = scalar_lea.sflag [#allocation7], %s218_s8  ;;  %s891_s21 = scalar_lea.hbm %s1153_s26, 256 }
  0x4b   : > { %p892_p0 = scmp.ne.s32.totalorder %s1153_s26, %s891_s21  ;;  %s896_s9 = scalar_lea.hbm %s1263_s1, 512 }
  0x4c   : > { %p897_p4 = scmp.lt.u32.totalorder %s1153_s26, %s1263_s1  ;;  %p898_p5 = scmp.lt.u32.totalorder %s896_s9, %s891_s21 }
  0x4d   : > { %p894_p6 = pnand %p892_p0, %p863_p12  ;;  %p900_p9 = scmp.lt.u32.totalorder %s891_s21, %s1153_s26 }
  0x4e   : > { %p899_p8 = por %p898_p5, %p897_p4 }
  0x4f   : > { %p895_p1 = pneg %p894_p6 }
  0x50   : > { %p901_p10 = por %p900_p9, %p899_p8 }
  0x52   : > { %p902_p11 = pnand %p901_p10, %p895_p1 }
  0x54   : > { %905 = shalt.err (!%p902_p11)
}
  0x55   : > { %s906_s30 = scalar_lea.vmem %s1157_s6, 256  ;;  %s987_s25 = smov [#allocation6]  }
  0x56   : > { %p907_p13 = scmp.ne.s32.totalorder %s1157_s6, %s906_s30  ;;  %s911_s29 = sshll.u32 %s987_s25, 4  ;;  %s912_s29 = int_to_ptr.vmem [resolvable:$false] %s911_s29 }
  0x57   : > { %s913_s8 = scalar_lea.vmem %s912_s29, 512  ;;  %p914_p0 = scmp.lt.s32.totalorder %s1157_s6, %s912_s29 }
  0x58   : > { %p909_p2 = pnand %p907_p13, %p863_p12  ;;  %p915_p6 = scmp.lt.s32.totalorder %s913_s8, %s906_s30 }
  0x5a   : > { %p910_p3 = pneg %p909_p2  ;;  %p916_p4 = por %p915_p6, %p914_p0 }
  0x5c   : > { %p917_p5 = pnand %p916_p4, %p910_p3 }
  0x5e   : > { %920 = shalt.err (!%p917_p5)
}
  0x5f   : > { %751 = dma.hbm_to_vmem [thread:$0]  (!%p1111_p7), %s1153_s26, 256, %s1157_s6, %s1159_s13, %s985_s12, %s985_s12, %s986_s14  }
  0x60   : > { %p1277_p12 = scmp.ne.s32.totalorder %s1274_s24, 0 }
  0x61   : > { %s243_s21 = sand.u32 (!%p1277_p12), 1, %s963_s16   ;;  %p1278_p1 = scmp.ne.s32.totalorder (!%p1277_p12), %s1273_s23, 0 }
  0x62   : > { %241 = sbr.rel (%p1277_p12) target bundleno = 542 (0x21e), region = 32  ;;  %s1191_s7 = sshll.u32 (!%p1277_p12), %s243_s21, 4 }
  0x63   : > { %s244_s27 = scalar_lea.sflag (!%p1277_p12), [#allocation5], %s243_s21  ;;  %s247_s9 = scalar_lea.vmem (!%p1277_p12), [#allocation4], %s1191_s7 }
  0x69   : > { %946 = dma.done.wait (%p1278_p1), %s244_s27, 256  }
  0x6a   : > { %948 = vsyncadd (%p1278_p1), %s244_s27, 4294967040  ;;  %s1279_s10 = sadd.s32 4294967295, %s979_s20   ;;  %s256_s14 = scalar_lea.vmem [#allocation6], %s1191_s7 }
  0x6b   : > { %s252_s12 = sand.u32 1, %s1279_s10  }
  0x6c   : > { %s253_s24 = scalar_lea.sflag [#allocation7], %s252_s12 }
  0x6d   : > { %950 = dma.done.wait (%p1278_p1), %s253_s24, 256  }
  0x6e   : > { %952 = vsyncadd (%p1278_p1), %s253_s24, 4294967040  ;;  %p1280_p7 = scmp.ne.s32.totalorder %s1272_s22, 0 }
  0x70   : > { %954 = dma.done.wait (%p1280_p7), [#allocation7], 1024  }
  0x71   : > { %956 = vsyncadd (%p1280_p7), [#allocation7], 4294966272  ;;  %vm321_vm0 = vcmask 7168   ;;  %v988_v0 = vmov 0.0   ;;  %v327_v1 = vld [vmem:[#allocation8 + $0x8] sm:$0xff]  ;;  %v329_v2 = vld [vmem:[#allocation8 + $0x18] sm:$0xff] }
  0x72   : > { %322 = vst.msk [vmem:[#allocation3] sm:$0xff] %vm321_vm0, %v988_v0  ;;  %323 = vst.msk [vmem:[#allocation3 + $0x8] sm:$0xff] %vm321_vm0, %v988_v0  ;;  %405 = vmatprep.mubr.f32.mxu0 %v988_v0  ;;  %411 = vmatprep.mubr.f32.mxu1 %v988_v0  ;;  %v326_v3 = vld [vmem:[#allocation8] sm:$0xff]  ;;  %v721_v4 = vpack.c.bf16 %v329_v2, %v327_v1  ;;  %v328_v5 = vld [vmem:[#allocation8 + $0x10] sm:$0xff]  ;;  %vm318_vm1 = vcmask 261120   ;;  %s711_s22 = sshll.u32 %s971_s18, 1 }
  0x73   : > { %v331_v6 = vld [vmem:[#allocation8 + $0x28] sm:$0xff]  ;;  %v333_v7 = vld [vmem:[#allocation8 + $0x38] sm:$0xff]  ;;  %v723_v8 = vpack.c.bf16 %v328_v5, %v326_v3  ;;  %v330_v10 = vld [vmem:[#allocation8 + $0x20] sm:$0xff]  ;;  %p299_p8 = scmp.lt.s32.totalorder %s711_s22, 3 }
  0x74   : > { %v725_v9 = vpack.c.bf16 %v333_v7, %v331_v6  ;;  %v332_v11 = vld [vmem:[#allocation8 + $0x30] sm:$0xff]  ;;  %722 = vmatprep.subr.bf16.mxu0 %v721_v4  ;;  %729 = vmatprep.subr.bf16.mxu1 %v721_v4  ;;  %v315_v13 = vld [vmem:[%s247_s9 + $0x8] sm:$0xff] }
  0x75   : > { %v314_v12 = vld [vmem:[%s247_s9] sm:$0xff]  ;;  %v501_v16 = vld [vmem:[%s256_s14 + $0x8] sm:$0xff]  ;;  %724 = vmatpush1.bf16.msra.mxu0 %v723_v8  ;;  %731 = vmatpush1.bf16.msra.mxu1 %v723_v8  ;;  %v727_v17 = vpack.c.bf16 %v332_v11, %v330_v10  ;;  %v317_v18 = vmul.f32 2.0, %v315_v13  ;;  %s1289_s22 = smov (!%p299_p8, %s711_s22), 3 }
  0x76   : > { %v316_v14 = vmul.f32 2.0, %v314_v12  ;;  %v500_v15 = vld [vmem:[%s256_s14] sm:$0xff]  ;;  %v503_v20 = vmul.f32 %v501_v16, %v315_v13  ;;  %726 = vmatprep.subr.bf16.mxu0 %v725_v9  ;;  %730 = vmatprep.subr.bf16.mxu1 %v725_v9  ;;  %s712_s23 = sshll.u32 %s1289_s22, 3 }
  0x77   : > { %v502_v19 = vmul.f32 %v500_v15, %v314_v12  ;;  %320 = vst.msk [vmem:[#allocation2 + $0x8] sm:$0xff] %vm318_vm1, %v317_v18  ;;  %s302_s6 = scalar_lea.vmem %s1265_s3, %s712_s23  ;;  %s308_s15 = scalar_lea.vmem %s1266_s4, %s712_s23 }
  0x78   : > { %319 = vst.msk [vmem:[#allocation2] sm:$0xff] %vm318_vm1, %v316_v14  ;;  %v507_v22 = vsel %vm318_vm1, %v503_v20, 0.0 }
  0x79   : > { %v504_v21 = vsel %vm318_vm1, %v502_v19, 0.0  ;;  %728 = vmatpush1.bf16.msra.mxu0 %v727_v17  ;;  %732 = vmatpush1.bf16.msra.mxu1 %v727_v17 }
  0x7a   : > { %505 = vadd.xlane.f32.xlu0 %v504_v21 }
  0x7e   : > { %508 = vadd.xlane.f32.xlu0 %v507_v22  ;;  %v325_v24 = vld [vmem:[#allocation2 + $0x8] sm:$0xff] }
  0x7f   : > { %v324_v23 = vld [vmem:[#allocation2] sm:$0xff]  ;;  %716 = vmatmul.mubr.msk.f32.vlgmr.msra.gmra.mrb[0].mxu1 %vm318_vm1, %v325_v24 }
  0x80   : > { %715 = vmatmul.mubr.msk.f32.vlgmr.msra.gmra.mrb[0].mxu0 %vm318_vm1, %v324_v23 }
 0x107   : > { %v506_v25 = vpop.xlane.xlu0 %505 }
 0x108   : > { %v510_v26 = vmul.f32 2.0, %v506_v25 }
 0x10a   : > { %v514_v27 = vand.u32 2147483647, %v510_v26  ;;  %v512_v46 = vmin.f32 %v510_v26, 0.0 }
 0x10b   : > { %v509_v28 = vpop.xlane.xlu0 %508 }
 0x10c   : > { %v516_v29 = vsub.f32 0.0, %v514_v27  ;;  %v511_v30 = vmul.f32 2.0, %v509_v28 }
 0x10e   : > { %v518_v31 = vmul.f32 1.442695, %v516_v29  ;;  %v515_v32 = vand.u32 2147483647, %v511_v30  ;;  %v513_v53 = vmin.f32 %v511_v30, 0.0 }
 0x110   : > { %809 = vpow2.f32 %v518_v31  ;;  %v517_v33 = vsub.f32 0.0, %v515_v32 }
 0x112   : > { %v520_v34 = vmul.f32 1.442695, %v517_v33 }
 0x114   : > { %811 = vpow2.f32 %v520_v34 }
 0x11a   : > { %v810_v35 = vpop.eup %809 }
 0x11b   : > { %v522_v36 = vadd.f32 1.0, %v810_v35  ;;  %v525_v38 = vmul.f32 -0.5, %v810_v35  ;;  %v528_v42 = vand.u32 2147483647, %v810_v35 }
 0x11d   : > { %813 = vlog2.f32 %v522_v36  ;;  %v526_v40 = vadd.f32 1.0, %v525_v38  ;;  %vm529_vm2 = vcmp.lt.f32.partialorder %v528_v42, 0.0004427343 }
 0x11e   : > { %v812_v37 = vpop.eup %811 }
 0x11f   : > { %v531_v39 = vadd.f32 1.0, %v812_v37  ;;  %v534_v41 = vmul.f32 -0.5, %v812_v37  ;;  %v527_v43 = vmul.f32 %v810_v35, %v526_v40  ;;  %v537_v47 = vand.u32 2147483647, %v812_v37 }
 0x121   : > { %815 = vlog2.f32 %v531_v39  ;;  %v535_v44 = vadd.f32 1.0, %v534_v41  ;;  %vm538_vm3 = vcmp.lt.f32.partialorder %v537_v47, 0.0004427343 }
 0x123   : > { %v536_v50 = vmul.f32 %v812_v37, %v535_v44 }
 0x127   : > { %v814_v45 = vpop.eup %813 }
 0x128   : > { %v524_v48 = vmul.f32 0.6931472, %v814_v45 }
 0x12a   : > { %v530_v49 = vsel %vm529_vm2, %v527_v43, %v524_v48 }
 0x12b   : > { %v816_v51 = vpop.eup %815  ;;  %v540_v52 = vsub.f32 %v512_v46, %v530_v49 }
 0x12c   : > { %v533_v54 = vmul.f32 0.6931472, %v816_v51 }
 0x12d   : > { %548 = vst.msk [vmem:[%s302_s6] sm:$0xff] %vm321_vm0, %v540_v52 }
 0x12e   : > { %v539_v55 = vsel %vm538_vm3, %v536_v50, %v533_v54 }
 0x12f   : > { %v541_v56 = vsub.f32 %v513_v53, %v539_v55 }
 0x131   : > { %549 = vst.msk [vmem:[%s302_s6 + $0x8] sm:$0xff] %vm321_vm0, %v541_v56 }
 0x152   : > { %v413_v59 = vpop.f32.mrb[0].mxu1 }
 0x153   : > { %v407_v57 = vpop.f32.mrb[0].mxu0  ;;  %v422_v61 = vsub.f32 0.0, %v413_v59  ;;  %v1232_v63 = vpop.f32.mrb[1].mxu1  ;;  %v418_v59 = vld [vmem:[#allocation3] sm:$0xff] }
 0x154   : > { %v420_v58 = vsub.f32 0.0, %v407_v57  ;;  %v409_v60 = vpop.f32.mrb[1].mxu0  ;;  %v423_v1 = vsub.f32 0.0, %v1232_v63 }
 0x155   : > { %v421_v62 = vsub.f32 0.0, %v409_v60  ;;  %v430_v2 = vand.u32 2147483647, %v422_v61  ;;  %v426_v34 = vmin.f32 %v422_v61, 0.0 }
 0x156   : > { %v428_v0 = vand.u32 2147483647, %v420_v58  ;;  %v431_v5 = vand.u32 2147483647, %v423_v1  ;;  %v424_v31 = vmin.f32 %v420_v58, 0.0  ;;  %v427_v52 = vmin.f32 %v423_v1, 0.0 }
 0x157   : > { %v429_v3 = vand.u32 2147483647, %v421_v62  ;;  %v434_v6 = vsub.f32 0.0, %v430_v2  ;;  %v425_v46 = vmin.f32 %v421_v62, 0.0  ;;  %v419_v62 = vld [vmem:[#allocation3 + $0x8] sm:$0xff] }
 0x158   : > { %v432_v4 = vsub.f32 0.0, %v428_v0  ;;  %v435_v9 = vsub.f32 0.0, %v431_v5 }
 0x159   : > { %v433_v7 = vsub.f32 0.0, %v429_v3  ;;  %v440_v10 = vmul.f32 1.442695, %v434_v6 }
 0x15a   : > { %v436_v8 = vmul.f32 1.442695, %v432_v4  ;;  %v442_v12 = vmul.f32 1.442695, %v435_v9 }
 0x15b   : > { %v438_v11 = vmul.f32 1.442695, %v433_v7 }
 0x15c   : > { %817 = vpow2.f32 %v436_v8 }
 0x15d   : > { %819 = vpow2.f32 %v440_v10 }
 0x15e   : > { %821 = vpow2.f32 %v438_v11 }
 0x15f   : > { %823 = vpow2.f32 %v442_v12 }
 0x166   : > { %v818_v13 = vpop.eup %817 }
 0x167   : > { %v820_v14 = vpop.eup %819  ;;  %v444_v15 = vadd.f32 1.0, %v818_v13  ;;  %v447_v21 = vmul.f32 -0.5, %v818_v13  ;;  %v450_v26 = vand.u32 2147483647, %v818_v13 }
 0x168   : > { %v822_v16 = vpop.eup %821  ;;  %v462_v17 = vadd.f32 1.0, %v820_v14  ;;  %v465_v22 = vmul.f32 -0.5, %v820_v14  ;;  %v468_v29 = vand.u32 2147483647, %v820_v14 }
 0x169   : > { %v824_v18 = vpop.eup %823  ;;  %825 = vlog2.f32 %v444_v15  ;;  %v453_v19 = vadd.f32 1.0, %v822_v16  ;;  %v456_v23 = vmul.f32 -0.5, %v822_v16  ;;  %v448_v24 = vadd.f32 1.0, %v447_v21 }
 0x16a   : > { %827 = vlog2.f32 %v462_v17  ;;  %v471_v20 = vadd.f32 1.0, %v824_v18  ;;  %v474_v25 = vmul.f32 -0.5, %v824_v18  ;;  %v466_v27 = vadd.f32 1.0, %v465_v22 }
 0x16b   : > { %829 = vlog2.f32 %v453_v19  ;;  %v457_v28 = vadd.f32 1.0, %v456_v23  ;;  %v459_v32 = vand.u32 2147483647, %v822_v16  ;;  %v449_v36 = vmul.f32 %v818_v13, %v448_v24 }
 0x16c   : > { %831 = vlog2.f32 %v471_v20  ;;  %v475_v37 = vadd.f32 1.0, %v474_v25  ;;  %vm451_vm4 = vcmp.lt.f32.partialorder %v450_v26, 0.0004427343  ;;  %v467_v40 = vmul.f32 %v820_v14, %v466_v27 }
 0x16d   : > { %v477_v41 = vand.u32 2147483647, %v824_v18  ;;  %v458_v44 = vmul.f32 %v822_v16, %v457_v28  ;;  %vm469_vm5 = vcmp.lt.f32.partialorder %v468_v29, 0.0004427343  ;;  %vm460_vm6 = vcmp.lt.f32.partialorder %v459_v32, 0.0004427343 }
 0x16e   : > { %v476_v51 = vmul.f32 %v824_v18, %v475_v37 }
 0x16f   : > { %vm478_vm7 = vcmp.lt.f32.partialorder %v477_v41, 0.0004427343 }
 0x173   : > { %v826_v30 = vpop.eup %825 }
 0x174   : > { %v828_v33 = vpop.eup %827  ;;  %v446_v35 = vmul.f32 0.6931472, %v826_v30 }
 0x175   : > { %v830_v38 = vpop.eup %829  ;;  %v464_v39 = vmul.f32 0.6931472, %v828_v33 }
 0x176   : > { %v452_v42 = vsel %vm451_vm4, %v449_v36, %v446_v35  ;;  %v455_v43 = vmul.f32 0.6931472, %v830_v38  ;;  %v832_v45 = vpop.eup %831 }
 0x177   : > { %v480_v47 = vsub.f32 %v424_v31, %v452_v42  ;;  %v470_v48 = vsel %vm469_vm5, %v467_v40, %v464_v39  ;;  %v473_v50 = vmul.f32 0.6931472, %v832_v45 }
 0x178   : > { %v461_v49 = vsel %vm460_vm6, %v458_v44, %v455_v43  ;;  %v482_v54 = vsub.f32 %v426_v34, %v470_v48 }
 0x179   : > { %v481_v53 = vsub.f32 %v425_v46, %v461_v49  ;;  %v479_v55 = vsel %vm478_vm7, %v476_v51, %v473_v50 }
 0x17a   : > { %v483_v57 = vsub.f32 %v427_v52, %v479_v55 }
 0x17b   : > { %v484_v56 = vadd.f32 %v481_v53, %v480_v47 }
 0x17c   : > { %v487_v58 = vadd.f32 %v483_v57, %v482_v54 }
 0x17d   : > { %485 = vadd.xlane.f32.xlu1 %v484_v56 }
 0x181   : > { %488 = vadd.xlane.f32.xlu1 %v487_v58 }
 0x20a   : > { %v486_v60 = vpop.xlane.xlu1 %485 }
 0x20b   : > { %v490_v61 = vadd.f32 %v486_v60, %v418_v59 }
 0x20d   : > { %493 = vst.msk [vmem:[#allocation3] sm:$0xff] %vm321_vm0, %v490_v61 }
 0x20e   : > { %v489_v63 = vpop.xlane.xlu1 %488 }
 0x20f   : > { %v491_v0 = vadd.f32 %v489_v63, %v419_v62 }
 0x211   : > { %494 = vst.msk [vmem:[#allocation3 + $0x8] sm:$0xff] %vm321_vm0, %v491_v0 }
 0x214   : > { %v542_v1 = vld [vmem:[#allocation3] sm:$0xff] }
 0x215   : > { %v544_v2 = vadd.f32 38.816242, %v542_v1 }
 0x217   : > { %v546_v3 = vmul.f32 0.005, %v544_v2 }
 0x218   : > { %v543_v4 = vld [vmem:[#allocation3 + $0x8] sm:$0xff] }
 0x219   : > { %550 = vst.msk [vmem:[%s308_s15] sm:$0xff] %vm321_vm0, %v546_v3  ;;  %v545_v5 = vadd.f32 38.816242, %v543_v4 }
 0x21b   : > { %v547_v6 = vmul.f32 0.005, %v545_v5 }
 0x21d   : > { %551 = vst.msk [vmem:[%s308_s15 + $0x8] sm:$0xff] %vm321_vm0, %v547_v6 }
 0x21e PF: > { %s21_s20 = sadd.s32 1, %s979_s20   ;;  %s1281_s15 = smov %s963_s16 }
 0x21f   : > { %p18_p9 = scmp.ge.s32.totalorder %s21_s20, 4   ;;  %s1282_s16 = smov %s967_s17 }
 0x220   : > { %s1283_s17 = smov %s1101_s5  ;;  %s1284_s18 = smov %s975_s19 }
 0x221   : > { %s1285_s19 = smov %s1287_s28  ;;  %20 = sbr.rel (!%p18_p9) target bundleno = 6 (0x6), region = 110 }
 0x228   :  { %591 = vsyncpa [#allocation5], 1 }
 0x229   :  { %593 = vsyncpa [#allocation5 + $0x1], 1 }
 0x22a   :  { %594 = vsyncpa [#allocation7], 1 }
 0x22b   :  { %596 = vsyncpa [#allocation7 + $0x1], 1 }

</bundles_post_ra>
